<compile_context>
chip_gen: v6e
topology: v6e:2x2x1
jax: 0.10.0
libtpu: 0.0.40
codegen_flags: <defaults>
</compile_context>

<pallas_src>
import math

import jax
import jax.numpy as jnp
from jax.experimental import pallas as pl
from jax.experimental.pallas import tpu as pltpu

LANES = 128
MIN_BLOCK_ROWS = 256    # keeps ~0.35us/step overhead <5% of per-step DMA time
MAX_BLOCK_ROWS = 4096   # 4096*128*4B = 2 MiB f32 per buffer
TARGET_STEPS = 8        # >=4 steps -> real pipelining; even -> balanced v7x 2-TC split


def _round_up(x, m):
    return ((x + m - 1) // m) * m


def _sublane(dtype):
    itemsize = jnp.dtype(dtype).itemsize
    return {4: 8, 2: 16, 1: 32}.get(itemsize, 8)


def _choose_block_rows(rows, dtype):
    """Block height giving >= TARGET_STEPS balanced, even-count grid steps."""
    if rows <= MIN_BLOCK_ROWS:
        # Tiny tensor: a single step covering the whole array (a full-extent
        # block is always layout-legal, even if `rows` isn't sublane-aligned).
        return rows
    sub = _sublane(dtype)
    steps = max(TARGET_STEPS, pl.cdiv(rows, MAX_BLOCK_ROWS))
    steps = _round_up(steps, 2)                       # even -> balanced across 2 TCs
    br = _round_up(pl.cdiv(rows, steps), sub)
    return max(MIN_BLOCK_ROWS, min(br, MAX_BLOCK_ROWS))


def _gaussian_kernel_params(params_ref, x_ref, o_ref):
    # Learnable/traced-parameter path. params_ref (SMEM): [mu, c, amplitude]
    # with c = -0.5 / sigma^2 folded on the host.
    mu = params_ref[0]
    c = params_ref[1]
    amplitude = params_ref[2]
    x = x_ref[...].astype(jnp.float32)
    d = x - mu
    o_ref[...] = (amplitude * jnp.exp(c * d * d)).astype(o_ref.dtype)


def _make_static_kernel(mu, c, amplitude):
    # Static-parameter path: constants baked in at trace time; amplitude>0 is
    # folded into the exponent so there is no post-exp multiply.
    log_amp = math.log(amplitude) if amplitude > 0.0 else None

    def kernel(x_ref, o_ref):
        x = x_ref[...].astype(jnp.float32)
        d = x if mu == 0.0 else x - mu
        e = c * d * d
        if log_amp is not None:
            if log_amp != 0.0:
                e = e + log_amp
            y = jnp.exp(e)
        else:
            y = amplitude * jnp.exp(e)   # amplitude <= 0: keep post-exp multiply
        o_ref[...] = y.astype(o_ref.dtype)

    return kernel


def _run_rows(x2d, mu, sigma, amplitude):
    """Run the Pallas kernel over a lane-dense (rows, 128) slab."""
    rows, _ = x2d.shape
    dtype = x2d.dtype
    n = rows * LANES
    itemsize = jnp.dtype(dtype).itemsize

    block_rows = _choose_block_rows(rows, dtype)
    grid = (pl.cdiv(rows, block_rows),)

    x_spec = pl.BlockSpec((block_rows, LANES), lambda i: (i, 0))
    o_spec = pl.BlockSpec((block_rows, LANES), lambda i: (i, 0))
    out_shape = jax.ShapeDtypeStruct((rows, LANES), dtype)
    compiler_params = pltpu.CompilerParams(dimension_semantics=("parallel",))
    cost = pl.CostEstimate(flops=4 * n, transcendentals=n,
                           bytes_accessed=2 * n * itemsize)

    static = all(isinstance(p, (int, float)) for p in (mu, sigma, amplitude))

    if static:
        kernel = _make_static_kernel(
            float(mu), -0.5 / (float(sigma) * float(sigma)), float(amplitude))
        return pl.pallas_call(
            kernel,
            out_shape=out_shape,
            grid_spec=pltpu.PrefetchScalarGridSpec(
                num_scalar_prefetch=0, grid=grid,
                in_specs=[x_spec], out_specs=o_spec),
            compiler_params=compiler_params,
            cost_estimate=cost,
        )(x2d)

    # Traced / learnable parameters -> ship [mu, -0.5/sigma^2, amplitude] in SMEM.
    mu_f = jnp.asarray(mu, jnp.float32)
    sigma_f = jnp.asarray(sigma, jnp.float32)
    amp_f = jnp.asarray(amplitude, jnp.float32)
    params = jnp.stack([mu_f, -0.5 / (sigma_f * sigma_f), amp_f])
    return pl.pallas_call(
        _gaussian_kernel_params,
        out_shape=out_shape,
        grid_spec=pltpu.PrefetchScalarGridSpec(
            num_scalar_prefetch=0, grid=grid,
            in_specs=[pl.BlockSpec(memory_space=pltpu.SMEM), x_spec],
            out_specs=o_spec),
        compiler_params=compiler_params,
        cost_estimate=cost,
    )(params, x2d)


def _gaussian_ref(x, mu, sigma, amplitude):
    return amplitude * jnp.exp(-0.5 * jnp.square((x - mu) / sigma))


def gaussian_activation(x, mu=0.0, sigma=1.0, amplitude=1.0):
    """amplitude * exp(-0.5*((x-mu)/sigma)^2), elementwise, via Pallas TPU.

    mu/sigma/amplitude may be Python scalars (baked in at trace time) or JAX
    0-d arrays (learnable-parameter path through SMEM).
    """
    orig_shape = x.shape
    n = x.size
    if n == 0:
        return x

    x_flat = jnp.ravel(x)            # contiguous -> no copy
    rows = n // LANES
    rem = n % LANES

    if rem == 0:
        out2d = _run_rows(x_flat.reshape(rows, LANES), mu, sigma, amplitude)
        return out2d.reshape(orig_shape)

    # Ragged tail (< 128 elements): kernel over the lane-aligned prefix only,
    # tiny tail computed separately (no full-tensor pad / slice-copy passes).
    pieces = []
    if rows > 0:
        main = _run_rows(x_flat[: rows * LANES].reshape(rows, LANES),
                         mu, sigma, amplitude)
        pieces.append(main.reshape(-1))
    tail = _gaussian_ref(x_flat[rows * LANES:].astype(jnp.float32),
                         mu, sigma, amplitude)
    pieces.append(tail.astype(x.dtype))
    return jnp.concatenate(pieces).reshape(orig_shape)


if __name__ == "__main__":
    key = jax.random.PRNGKey(0)
    # NCHW input, small shapes: batch=2, channels=4, spatial=16x16
    x = jax.random.normal(key, (2, 4, 16, 16), dtype=jnp.float32)

    # Static-parameter path (module defaults as Python floats).
    mu_s, sigma_s, amp_s = 0.0, 1.0, 1.0
    y_static = jax.block_until_ready(gaussian_activation(x, mu_s, sigma_s, amp_s))
    ref_static = _gaussian_ref(x, mu_s, sigma_s, amp_s)
    assert y_static.shape == x.shape and y_static.dtype == x.dtype
    assert jnp.allclose(y_static, ref_static, atol=1e-6, rtol=1e-6)

    # Learnable-parameter path (0-d f32 arrays, mirroring nn.Parameter).
    mu_p, sigma_p, amp_p = jnp.float32(0.3), jnp.float32(0.8), jnp.float32(1.7)
    y_param = jax.block_until_ready(gaussian_activation(x, mu_p, sigma_p, amp_p))
    ref_param = _gaussian_ref(x, mu_p, sigma_p, amp_p)
    assert y_param.shape == x.shape and y_param.dtype == x.dtype
    assert jnp.allclose(y_param, ref_param, atol=1e-5, rtol=1e-5)

    print("KERNEL_OK")
</pallas_src>

<mosaic_0001>
module attributes {stable_mosaic.version = 11 : i64} {
  func.func @kernel(%arg0: i32, %arg1: memref<16x128xf32, #tpu.memory_space<vmem>>, %arg2: memref<16x128xf32, #tpu.memory_space<vmem>>) attributes {dimension_semantics = [#tpu.dimension_semantics<parallel>], iteration_bounds = array<i64: 1>, scalar_prefetch = 0 : i64, scratch_operands = 0 : i64, tpu.core_type = #tpu.core_type<tc>, window_params = [{transform_indices = @transform_0, window_bounds = array<i64: 16, 128>}, {transform_indices = @transform_1, window_bounds = array<i64: 16, 128>}]} {
    %c0 = arith.constant 0 : index
    %c0_0 = arith.constant 0 : index
    %0 = vector.load %arg1[%c0, %c0_0] : memref<16x128xf32, #tpu.memory_space<vmem>>, vector<16x128xf32>
    %cst = arith.constant -5.000000e-01 : f32
    %1 = vector.broadcast %cst : f32 to vector<16x128xf32>
    %2 = arith.mulf %1, %0 : vector<16x128xf32>
    %3 = arith.mulf %2, %0 : vector<16x128xf32>
    %4 = math.exp %3 : vector<16x128xf32>
    %c0_1 = arith.constant 0 : index
    %c0_2 = arith.constant 0 : index
    %5 = vector.load %arg2[%c0_1, %c0_2] : memref<16x128xf32, #tpu.memory_space<vmem>>, vector<16x128xf32>
    tpu.vector_store %arg2[%c0_1, %c0_2], %4 {strides = array<i32>} : memref<16x128xf32, #tpu.memory_space<vmem>>, vector<16x128xf32>,
    return
  }
  func.func @transform_0(%arg0: i32) -> (i32, i32) {
    %c0_i32 = arith.constant 0 : i32
    %c0_i32_0 = arith.constant 0 : i32
    return %arg0, %c0_i32 : i32, i32
  }
  func.func @transform_1(%arg0: i32) -> (i32, i32) {
    %c0_i32 = arith.constant 0 : i32
    %c0_i32_0 = arith.constant 0 : i32
    return %arg0, %c0_i32 : i32, i32
  }
}

</mosaic_0001>

<bundles_post_ra>
// kernel: tpu_custom_call.1
= control target key start
LH: loop header
LB: loop body
LE: loop exit
PB: predicated region body
PF: predicated region fallthrough
CT: control target
= control target key end

     0   :  { %6 = vsyncpa [#allocation3], 0  ;;  %s130_s0 = inlined_call_operand.hbm [shape: f32[16,128], index: 0, kind: input, shape index: {}]   ;;  %s131_s1 = inlined_call_operand.hbm [shape: f32[16,128], index: 1, kind: output, shape index: {}]  }
   0x1   :  { %7 = vsyncpa [#allocation4], 0  ;;  %s104_s6 = smov [#allocation2]  }
   0x2   :  { %s13_s7 = sshll.u32 %s104_s6, 4  ;;  %s14_s7 = int_to_ptr.vmem [resolvable:$true] %s13_s7 }
   0x3   :  { %s68_s8 = scalar_lea.vmem %s14_s7, 256  ;;  %p73_p1 = scmp.lt.s32.totalorder %s14_s7, %s14_s7 }
   0x4   :  { %p69_p0 = scmp.ne.s32.totalorder %s14_s7, %s68_s8  ;;  %p74_p2 = scmp.lt.s32.totalorder %s68_s8, %s68_s8 }
   0x6   :  { %p75_p3 = por %p74_p2, %p73_p1 }
   0x8   :  { %p76_p4 = pnand %p75_p3, %p69_p0 }
   0xa   :  { %79 = shalt.err (!%p76_p4)
}
   0xb   :  { %s105_s9 = smov 128   ;;  %s106_s10 = smov 8  }
   0xc   :  { %19 = dma.hbm_to_vmem [thread:$0]  %s130_s0, 256, %s14_s7, [#allocation3], %s105_s9, %s105_s9, %s106_s10  }
   0xd   :  { %100 = dma.done.wait [#allocation3], 256  }
   0xe   :  { %101 = vsyncadd [#allocation3], 4294967040  ;;  %v23_v0 = vld [vmem:[#allocation2] sm:$0xff]  ;;  %v24_v1 = vld [vmem:[#allocation2 + $0x8] sm:$0xff]  ;;  %s107_s13 = smov [#allocation5]  }
   0xf   :  { %v25_v2 = vmul.f32 -0.5, %v23_v0  ;;  %v26_v3 = vmul.f32 -0.5, %v24_v1  ;;  %s40_s14 = sshll.u32 %s107_s13, 4  ;;  %s41_s14 = int_to_ptr.vmem [resolvable:$true] %s40_s14 }
  0x10   :  { %s80_s0 = scalar_lea.vmem %s41_s14, 256  ;;  %p85_p6 = scmp.lt.s32.totalorder %s41_s14, %s41_s14 }
  0x11   :  { %v27_v4 = vmul.f32 %v25_v2, %v23_v0  ;;  %v28_v5 = vmul.f32 %v26_v3, %v24_v1  ;;  %p81_p5 = scmp.ne.s32.totalorder %s41_s14, %s80_s0  ;;  %p86_p7 = scmp.lt.s32.totalorder %s80_s0, %s80_s0 }
  0x13   :  { %v29_v6 = vmul.f32 1.442695, %v27_v4  ;;  %v31_v7 = vmul.f32 1.442695, %v28_v5  ;;  %p87_p8 = por %p86_p7, %p85_p6 }
  0x15   :  { %56 = vpow2.f32 %v29_v6  ;;  %p88_p9 = pnand %p87_p8, %p81_p5 }
  0x16   :  { %58 = vpow2.f32 %v31_v7 }
  0x22   :  { %v57_v8 = vpop.eup %56 }
  0x23   :  { %v59_v9 = vpop.eup %58  ;;  %33 = vst [vmem:[#allocation5] sm:$0xff] %v57_v8 }
  0x24   :  { %34 = vst [vmem:[#allocation5 + $0x8] sm:$0xff] %v59_v9 }
  0x25   :  { %91 = shalt.err (!%p88_p9)
}
  0x26   :  { %46 = dma.vmem_to_hbm [thread:$0]  %s41_s14, 256, %s131_s1, [#allocation4], %s105_s9, %s105_s9, %s106_s10  }
  0x27   :  { %102 = dma.done.wait [#allocation4], 256  }
  0x28   :  { %103 = vsyncadd [#allocation4], 4294967040 }
  0x29   :  { %50 = vsyncpa [#allocation3], 1 }
  0x2a   :  { %51 = vsyncpa [#allocation4], 1 }

</bundles_post_ra>
